<compile_context>
chip_gen: v7x
topology: tpu7x:2x2x1
jax: 0.10.0
libtpu: 0.0.40
codegen_flags: <defaults>
</compile_context>

<pallas_src>
import functools

import jax
import jax.numpy as jnp
from jax.experimental import pallas as pl
from jax.experimental.pallas import tpu as pltpu

_LANE = 128
_SUBLANE = 8


def _cdiv(a, b):
    return -(-a // b)


def _round_up(x, m):
    return _cdiv(x, m) * m


def _make_kernel(k_in, n_hidden, pw, po, mm_dtype):
    """Build the MLP kernel body with static layer count / (packed) shapes.

    Ref order: x, w1, [wh], wo, b, out.
    """

    def kernel(*refs):
        if n_hidden > 0:
            x_ref, w1_ref, wh_ref, wo_ref, b_ref, o_ref = refs
        else:
            x_ref, w1_ref, wo_ref, b_ref, o_ref = refs
            wh_ref = None

        x = x_ref[...]

        # Hoist all bias loads / lane slices out of the unrolled layer loop
        # (JAX does not CSE re-materialized broadcasts).
        b_all = b_ref[...]                              # (n_hidden + 2, 1, pmax) f32
        b1 = b_all[0, :, :pw]
        bh = [b_all[1 + i, :, :pw] for i in range(n_hidden)]
        bo = b_all[1 + n_hidden, :, :po]

        # ---- First layer.  After packing K = r * inputs is tiny (<= 8 here),
        # so do VPU broadcast multiply-adds instead of a near-empty MXU pass.
        w1 = w1_ref[...]
        if k_in <= 8:
            h = b1
            for k in range(k_in):
                h = h + x[:, k:k + 1] * w1[k:k + 1, :]
        else:
            h = jnp.dot(x.astype(mm_dtype), w1,
                        preferred_element_type=jnp.float32) + b1
        h = jnp.maximum(h, 0.0)

        # ---- Hidden layers (statically unrolled): Linear(width, width) + ReLU.
        # Matmul operands may be bf16 (mm_dtype); accumulation / ReLU stay f32.
        for i in range(n_hidden):
            h = jnp.dot(h.astype(mm_dtype), wh_ref[i],
                        preferred_element_type=jnp.float32)
            h = jnp.maximum(h + bh[i], 0.0)

        # ---- Output layer: Linear(width, n_controls * n_steps), no activation.
        out = jnp.dot(h.astype(mm_dtype), wo_ref[...],
                      preferred_element_type=jnp.float32)
        o_ref[...] = (out + bo).astype(o_ref.dtype)

    return kernel


def init_params(key, inputs, layers, width, n_controls, n_steps):
    """PyTorch-style uniform(+-1/sqrt(fan_in)) init; raw (unpacked) shapes."""
    out_dim = n_controls * n_steps
    keys = jax.random.split(key, 2 * (layers + 2))

    def lin(kw, kb, fan_in, fan_out):
        bound = 1.0 / jnp.sqrt(jnp.float32(fan_in))
        w = jax.random.uniform(kw, (fan_in, fan_out), jnp.float32, -bound, bound)
        b = jax.random.uniform(kb, (1, fan_out), jnp.float32, -bound, bound)
        return w, b

    w1, b1 = lin(keys[0], keys[1], inputs, width)
    wh_list, bh_list = [], []
    for i in range(layers):
        w, b = lin(keys[2 + 2 * i], keys[3 + 2 * i], width, width)
        wh_list.append(w)
        bh_list.append(b)
    wo, bo = lin(keys[2 + 2 * layers], keys[3 + 2 * layers], width, out_dim)

    return {"w1": w1, "b1": b1, "wh": wh_list, "bh": bh_list, "wo": wo, "bo": bo}


def pack_params(params, matmul_dtype=jnp.float32):
    """Lane-pack the parameters for the kernel.

    For small widths, r = 128 // max(width, out_dim) samples share one 128-lane
    row: weights become r-fold block-diagonal, biases are tiled r times.  The
    zero off-diagonal blocks contribute exactly nothing (ReLU(0) = 0), so the
    math matches the unpacked network up to f32 summation order.

    matmul_dtype: dtype of the matmul operands (f32 for exact parity, bf16 for
    faster MXU / half the resident weight bytes on v6e/v7x).  Biases stay f32.
    """
    w1, b1 = params["w1"], params["b1"]
    wh_list, bh_list = params["wh"], params["bh"]
    wo, bo = params["wo"], params["bo"]

    n_in, width = w1.shape
    layers = len(wh_list)
    out_dim = wo.shape[1]

    if width <= _LANE and out_dim <= _LANE:
        r = max(1, min(_LANE // width, _LANE // out_dim))
    else:
        r = 1

    k_in = r * n_in
    pw = r * width
    po = r * out_dim
    pmax = max(pw, po)

    def bdiag(w):
        return jax.scipy.linalg.block_diag(*([w.astype(jnp.float32)] * r))

    w1_p = bdiag(w1).astype(matmul_dtype)                        # (k_in, pw)
    wo_p = bdiag(wo).astype(matmul_dtype)                        # (pw, po)
    wh_p = (jnp.stack([bdiag(w) for w in wh_list], axis=0).astype(matmul_dtype)
            if layers > 0 else None)                             # (layers, pw, pw)

    def pack_bias(b):
        bt = jnp.tile(b.astype(jnp.float32), (1, r))
        return jnp.pad(bt, ((0, 0), (0, pmax - bt.shape[1])))

    b_all = jnp.stack([pack_bias(b1)] + [pack_bias(b) for b in bh_list]
                      + [pack_bias(bo)], axis=0)                 # (layers+2, 1, pmax)

    return {
        "w1": w1_p, "wh": wh_p, "wo": wo_p, "b": b_all,
        "r": r, "k_in": k_in, "pw": pw, "po": po,
        "n_inputs": n_in, "layers": layers,
        "width": width, "out_dim": out_dim,
        "matmul_dtype": matmul_dtype,
    }


def control_nn_forward(x, packed, *, block_batch=2048):
    """Forward pass of ControlNN as a Pallas TPU kernel.

    x: (batch, inputs).  Returns (batch, n_controls * n_steps) float32.
    block_batch: target number of logical samples per grid step (large batches).
    """
    x = x.astype(jnp.float32)            # mirrors `x = x.float()` in the module
    batch, n_in = x.shape
    assert n_in == packed["n_inputs"]

    r, k_in = packed["r"], packed["k_in"]
    pw, po = packed["pw"], packed["po"]
    layers = packed["layers"]
    out_dim = packed["out_dim"]
    mm_dtype = packed["matmul_dtype"]

    # Lane-pack r logical samples per physical row.
    rows = _cdiv(batch, r)
    bpad = rows * r
    if bpad != batch:
        x = jnp.pad(x, ((0, bpad - batch), (0, 0)))
    xp = x.reshape(rows, k_in)

    kernel = _make_kernel(k_in, layers, pw, po, mm_dtype)

    w_args = [packed["w1"]]
    if layers > 0:
        w_args.append(packed["wh"])
    w_args += [packed["wo"], packed["b"]]
    w_bytes = sum(int(a.size) * a.dtype.itemsize for a in w_args)

    def vmem_limit(n_rows, buffered):
        io = n_rows * (k_in + po) * 4 * (2 if buffered else 1)   # x/out (dbl-buf)
        act = n_rows * max(pw, po) * 4 * (layers + 3)            # intermediates
        est = 2 * (io + act + w_bytes) + (4 << 20)
        return int(min(max(est, 32 << 20), 64 << 20))            # v7x phys = 64 MiB

    # Tile size over packed rows (block_batch logical samples per step).
    bm = _round_up(max(1, _cdiv(block_batch, r)), _SUBLANE)

    if rows <= bm:
        # ---- Small batch: single shot, no grid, everything resident in VMEM.
        vmem = pl.BlockSpec(memory_space=pltpu.MemorySpace.VMEM)
        out = pl.pallas_call(
            kernel,
            out_shape=jax.ShapeDtypeStruct((rows, po), jnp.float32),
            in_specs=[vmem] * (1 + len(w_args)),
            out_specs=vmem,
            compiler_params=pltpu.CompilerParams(
                vmem_limit_bytes=vmem_limit(rows, buffered=False)),
        )(xp, *w_args)
    else:
        # ---- Large batch: 1-D grid over packed rows.  Weights/biases use
        # constant index maps (DMA'd once, VMEM-resident).  The final partial
        # tile is handled by Pallas (masked tail store) -> no batch padding.
        grid_n = _cdiv(rows, bm)
        if grid_n > 1 and grid_n % 2 == 1:
            # Prefer an even number of grid steps (v7x megacore: 2 TCs).
            bm_even = _round_up(_cdiv(rows, grid_n + 1), _SUBLANE)
            if _cdiv(rows, bm_even) % 2 == 0:
                bm = bm_even
                grid_n = _cdiv(rows, bm)

        def resident(shape):
            zeros = (0,) * len(shape)
            return pl.BlockSpec(shape, lambda i: zeros)

        in_specs = [pl.BlockSpec((bm, k_in), lambda i: (i, 0))]
        in_specs += [resident(a.shape) for a in w_args]
        out_specs = pl.BlockSpec((bm, po), lambda i: (i, 0))

        out = pl.pallas_call(
            kernel,
            out_shape=jax.ShapeDtypeStruct((rows, po), jnp.float32),
            grid=(grid_n,),
            in_specs=in_specs,
            out_specs=out_specs,
            compiler_params=pltpu.CompilerParams(
                dimension_semantics=("parallel",),
                vmem_limit_bytes=vmem_limit(bm, buffered=True)),
        )(xp, *w_args)

    # Un-pack lanes back to one sample per row and drop the r-padding rows.
    return out.reshape(rows * r, out_dim)[:batch]


def reference_forward(x, params):
    """Plain-JAX reference (unpacked f32 params), full-precision matmuls."""
    x = x.astype(jnp.float32)
    dot = functools.partial(jnp.dot, precision=jax.lax.Precision.HIGHEST)
    h = jnp.maximum(dot(x, params["w1"]) + params["b1"], 0.0)
    for w, b in zip(params["wh"], params["bh"]):
        h = jnp.maximum(dot(h, w) + b, 0.0)
    return dot(h, params["wo"]) + params["bo"]


if __name__ == "__main__":
    # ControlNN(inputs=2, layers=2, width=32, n_controls=4, n_steps=8)
    inputs, layers, width, n_controls, n_steps = 2, 2, 32, 4, 8
    out_dim = n_controls * n_steps

    key = jax.random.PRNGKey(0)
    k_params, k_x1, k_x2, k_x3 = jax.random.split(key, 4)
    params = init_params(k_params, inputs, layers, width, n_controls, n_steps)

    packed_f32 = pack_params(params)                             # exact-parity path
    packed_bf16 = pack_params(params, matmul_dtype=jnp.bfloat16)  # v6e/v7x MXU path

    # Tolerances are set to absorb TPU MXU matmul-pass precision differences
    # (f32 kernel vs. HIGHEST-precision reference); real bugs produce O(0.1+) errors.
    TOL_F32 = dict(atol=2e-2, rtol=2e-2)
    TOL_BF16 = dict(atol=6e-2, rtol=6e-2)

    # 1) Small batch -> gridless, full-VMEM, lane-packed path.
    x_small = jax.random.uniform(k_x1, (8, inputs), jnp.float32, 0.0, 1.0)
    out_small = jax.block_until_ready(control_nn_forward(x_small, packed_f32))
    ref_small = reference_forward(x_small, params)
    assert out_small.shape == (8, out_dim)
    assert jnp.allclose(out_small, ref_small, **TOL_F32)

    # 2) Large batch (non-multiple of everything) -> grid path, even step count,
    #    partial final tile handled by Pallas.
    x_big = jax.random.uniform(k_x2, (3000, inputs), jnp.float32, 0.0, 1.0)
    out_big = jax.block_until_ready(
        control_nn_forward(x_big, packed_f32, block_batch=1024))
    ref_big = reference_forward(x_big, params)
    assert out_big.shape == (3000, out_dim)
    assert jnp.allclose(out_big, ref_big, **TOL_F32)

    # 3) bf16 matmul operands (v6e/v7x optimization), grid path, batch not a
    #    multiple of the packing factor.
    x_med = jax.random.uniform(k_x3, (1001, inputs), jnp.float32, 0.0, 1.0)
    out_bf16 = jax.block_until_ready(
        control_nn_forward(x_med, packed_bf16, block_batch=512))
    ref_med = reference_forward(x_med, params)
    assert out_bf16.shape == (1001, out_dim)
    assert jnp.allclose(out_bf16, ref_med, **TOL_BF16)

    print("KERNEL_OK")
</pallas_src>

<mosaic_0001>
module attributes {stable_mosaic.version = 11 : i64} {
  func.func @kernel(%arg0: memref<2x8xf32, #tpu.memory_space<vmem>>, %arg1: memref<8x128xf32, #tpu.memory_space<vmem>>, %arg2: memref<2x128x128xf32, #tpu.memory_space<vmem>>, %arg3: memref<128x128xf32, #tpu.memory_space<vmem>>, %arg4: memref<4x1x128xf32, #tpu.memory_space<vmem>>, %arg5: memref<2x128xf32, #tpu.memory_space<vmem>>) attributes {dimension_semantics = [], scalar_prefetch = 0 : i64, scratch_operands = 0 : i64, tpu.core_type = #tpu.core_type<tc>} {
    %c0 = arith.constant 0 : index
    %c0_0 = arith.constant 0 : index
    %0 = vector.load %arg0[%c0, %c0_0] : memref<2x8xf32, #tpu.memory_space<vmem>>, vector<2x8xf32>
    %c0_1 = arith.constant 0 : index
    %c0_2 = arith.constant 0 : index
    %c0_3 = arith.constant 0 : index
    %1 = vector.load %arg4[%c0_1, %c0_2, %c0_3] : memref<4x1x128xf32, #tpu.memory_space<vmem>>, vector<4x1x128xf32>
    %2 = vector.extract_strided_slice %1 {offsets = [0, 0, 0], sizes = [1, 1, 128], strides = [1, 1, 1]} : vector<4x1x128xf32> to vector<1x1x128xf32>
    %3 = vector.shape_cast %2 : vector<1x1x128xf32> to vector<1x128xf32>
    %4 = vector.extract_strided_slice %1 {offsets = [1, 0, 0], sizes = [1, 1, 128], strides = [1, 1, 1]} : vector<4x1x128xf32> to vector<1x1x128xf32>
    %5 = vector.shape_cast %4 : vector<1x1x128xf32> to vector<1x128xf32>
    %6 = vector.extract_strided_slice %1 {offsets = [2, 0, 0], sizes = [1, 1, 128], strides = [1, 1, 1]} : vector<4x1x128xf32> to vector<1x1x128xf32>
    %7 = vector.shape_cast %6 : vector<1x1x128xf32> to vector<1x128xf32>
    %8 = vector.extract_strided_slice %1 {offsets = [3, 0, 0], sizes = [1, 1, 128], strides = [1, 1, 1]} : vector<4x1x128xf32> to vector<1x1x128xf32>
    %9 = vector.shape_cast %8 : vector<1x1x128xf32> to vector<1x128xf32>
    %c0_4 = arith.constant 0 : index
    %c0_5 = arith.constant 0 : index
    %10 = vector.load %arg1[%c0_4, %c0_5] : memref<8x128xf32, #tpu.memory_space<vmem>>, vector<8x128xf32>
    %11 = vector.extract_strided_slice %0 {offsets = [0, 0], sizes = [2, 1], strides = [1, 1]} : vector<2x8xf32> to vector<2x1xf32>
    %12 = vector.extract_strided_slice %10 {offsets = [0, 0], sizes = [1, 128], strides = [1, 1]} : vector<8x128xf32> to vector<1x128xf32>
    %13 = vector.broadcast %11 : vector<2x1xf32> to vector<2x128xf32>
    %14 = vector.broadcast %12 : vector<1x128xf32> to vector<2x128xf32>
    %15 = arith.mulf %13, %14 : vector<2x128xf32>
    %16 = vector.broadcast %3 : vector<1x128xf32> to vector<2x128xf32>
    %17 = arith.addf %16, %15 : vector<2x128xf32>
    %18 = vector.extract_strided_slice %0 {offsets = [0, 1], sizes = [2, 1], strides = [1, 1]} : vector<2x8xf32> to vector<2x1xf32>
    %19 = vector.extract_strided_slice %10 {offsets = [1, 0], sizes = [1, 128], strides = [1, 1]} : vector<8x128xf32> to vector<1x128xf32>
    %20 = vector.broadcast %18 : vector<2x1xf32> to vector<2x128xf32>
    %21 = vector.broadcast %19 : vector<1x128xf32> to vector<2x128xf32>
    %22 = arith.mulf %20, %21 : vector<2x128xf32>
    %23 = arith.addf %17, %22 : vector<2x128xf32>
    %24 = vector.extract_strided_slice %0 {offsets = [0, 2], sizes = [2, 1], strides = [1, 1]} : vector<2x8xf32> to vector<2x1xf32>
    %25 = vector.extract_strided_slice %10 {offsets = [2, 0], sizes = [1, 128], strides = [1, 1]} : vector<8x128xf32> to vector<1x128xf32>
    %26 = vector.broadcast %24 : vector<2x1xf32> to vector<2x128xf32>
    %27 = vector.broadcast %25 : vector<1x128xf32> to vector<2x128xf32>
    %28 = arith.mulf %26, %27 : vector<2x128xf32>
    %29 = arith.addf %23, %28 : vector<2x128xf32>
    %30 = vector.extract_strided_slice %0 {offsets = [0, 3], sizes = [2, 1], strides = [1, 1]} : vector<2x8xf32> to vector<2x1xf32>
    %31 = vector.extract_strided_slice %10 {offsets = [3, 0], sizes = [1, 128], strides = [1, 1]} : vector<8x128xf32> to vector<1x128xf32>
    %32 = vector.broadcast %30 : vector<2x1xf32> to vector<2x128xf32>
    %33 = vector.broadcast %31 : vector<1x128xf32> to vector<2x128xf32>
    %34 = arith.mulf %32, %33 : vector<2x128xf32>
    %35 = arith.addf %29, %34 : vector<2x128xf32>
    %36 = vector.extract_strided_slice %0 {offsets = [0, 4], sizes = [2, 1], strides = [1, 1]} : vector<2x8xf32> to vector<2x1xf32>
    %37 = vector.extract_strided_slice %10 {offsets = [4, 0], sizes = [1, 128], strides = [1, 1]} : vector<8x128xf32> to vector<1x128xf32>
    %38 = vector.broadcast %36 : vector<2x1xf32> to vector<2x128xf32>
    %39 = vector.broadcast %37 : vector<1x128xf32> to vector<2x128xf32>
    %40 = arith.mulf %38, %39 : vector<2x128xf32>
    %41 = arith.addf %35, %40 : vector<2x128xf32>
    %42 = vector.extract_strided_slice %0 {offsets = [0, 5], sizes = [2, 1], strides = [1, 1]} : vector<2x8xf32> to vector<2x1xf32>
    %43 = vector.extract_strided_slice %10 {offsets = [5, 0], sizes = [1, 128], strides = [1, 1]} : vector<8x128xf32> to vector<1x128xf32>
    %44 = vector.broadcast %42 : vector<2x1xf32> to vector<2x128xf32>
    %45 = vector.broadcast %43 : vector<1x128xf32> to vector<2x128xf32>
    %46 = arith.mulf %44, %45 : vector<2x128xf32>
    %47 = arith.addf %41, %46 : vector<2x128xf32>
    %48 = vector.extract_strided_slice %0 {offsets = [0, 6], sizes = [2, 1], strides = [1, 1]} : vector<2x8xf32> to vector<2x1xf32>
    %49 = vector.extract_strided_slice %10 {offsets = [6, 0], sizes = [1, 128], strides = [1, 1]} : vector<8x128xf32> to vector<1x128xf32>
    %50 = vector.broadcast %48 : vector<2x1xf32> to vector<2x128xf32>
    %51 = vector.broadcast %49 : vector<1x128xf32> to vector<2x128xf32>
    %52 = arith.mulf %50, %51 : vector<2x128xf32>
    %53 = arith.addf %47, %52 : vector<2x128xf32>
    %54 = vector.extract_strided_slice %0 {offsets = [0, 7], sizes = [2, 1], strides = [1, 1]} : vector<2x8xf32> to vector<2x1xf32>
    %55 = vector.extract_strided_slice %10 {offsets = [7, 0], sizes = [1, 128], strides = [1, 1]} : vector<8x128xf32> to vector<1x128xf32>
    %56 = vector.broadcast %54 : vector<2x1xf32> to vector<2x128xf32>
    %57 = vector.broadcast %55 : vector<1x128xf32> to vector<2x128xf32>
    %58 = arith.mulf %56, %57 : vector<2x128xf32>
    %59 = arith.addf %53, %58 : vector<2x128xf32>
    %cst = arith.constant 0.000000e+00 : f32
    %60 = vector.broadcast %cst : f32 to vector<2x128xf32>
    %61 = arith.maximumf %59, %60 : vector<2x128xf32>
    %c0_6 = arith.constant 0 : index
    %c0_7 = arith.constant 0 : index
    %c0_8 = arith.constant 0 : index
    %62 = vector.load %arg2[%c0_6, %c0_7, %c0_8] : memref<2x128x128xf32, #tpu.memory_space<vmem>>, vector<1x128x128xf32>
    %63 = vector.shape_cast %62 : vector<1x128x128xf32> to vector<128x128xf32>
    %cst_9 = arith.constant dense<0.000000e+00> : vector<2x128xf32>
    %64 = tpu.matmul %61, %63, %cst_9 {dimension_numbers = #tpu.dot_dimension_numbers<[1], [0], [0], [1], [0, 0, 1, 1], [], []>} : vector<2x128xf32>, vector<128x128xf32>, vector<2x128xf32> -> vector<2x128xf32>
    %65 = vector.broadcast %5 : vector<1x128xf32> to vector<2x128xf32>
    %66 = arith.addf %64, %65 : vector<2x128xf32>
    %cst_10 = arith.constant 0.000000e+00 : f32
    %67 = vector.broadcast %cst_10 : f32 to vector<2x128xf32>
    %68 = arith.maximumf %66, %67 : vector<2x128xf32>
    %c1 = arith.constant 1 : index
    %c0_11 = arith.constant 0 : index
    %c0_12 = arith.constant 0 : index
    %69 = vector.load %arg2[%c1, %c0_11, %c0_12] : memref<2x128x128xf32, #tpu.memory_space<vmem>>, vector<1x128x128xf32>
    %70 = vector.shape_cast %69 : vector<1x128x128xf32> to vector<128x128xf32>
    %cst_13 = arith.constant dense<0.000000e+00> : vector<2x128xf32>
    %71 = tpu.matmul %68, %70, %cst_13 {dimension_numbers = #tpu.dot_dimension_numbers<[1], [0], [0], [1], [0, 0, 1, 1], [], []>} : vector<2x128xf32>, vector<128x128xf32>, vector<2x128xf32> -> vector<2x128xf32>
    %72 = vector.broadcast %7 : vector<1x128xf32> to vector<2x128xf32>
    %73 = arith.addf %71, %72 : vector<2x128xf32>
    %cst_14 = arith.constant 0.000000e+00 : f32
    %74 = vector.broadcast %cst_14 : f32 to vector<2x128xf32>
    %75 = arith.maximumf %73, %74 : vector<2x128xf32>
    %c0_15 = arith.constant 0 : index
    %c0_16 = arith.constant 0 : index
    %76 = vector.load %arg3[%c0_15, %c0_16] : memref<128x128xf32, #tpu.memory_space<vmem>>, vector<128x128xf32>
    %cst_17 = arith.constant dense<0.000000e+00> : vector<2x128xf32>
    %77 = tpu.matmul %75, %76, %cst_17 {dimension_numbers = #tpu.dot_dimension_numbers<[1], [0], [0], [1], [0, 0, 1, 1], [], []>} : vector<2x128xf32>, vector<128x128xf32>, vector<2x128xf32> -> vector<2x128xf32>
    %78 = vector.broadcast %9 : vector<1x128xf32> to vector<2x128xf32>
    %79 = arith.addf %77, %78 : vector<2x128xf32>
    %c0_18 = arith.constant 0 : index
    %c0_19 = arith.constant 0 : index
    %80 = vector.load %arg5[%c0_18, %c0_19] : memref<2x128xf32, #tpu.memory_space<vmem>>, vector<2x128xf32>
    tpu.vector_store %arg5[%c0_18, %c0_19], %79 {strides = array<i32>} : memref<2x128xf32, #tpu.memory_space<vmem>>, vector<2x128xf32>,
    return
  }
}

</mosaic_0001>

<bundles_post_ra>
// kernel: tpu_custom_call.1
= control target key start
LH: loop header
LB: loop body
LE: loop exit
PB: predicated region body
PF: predicated region fallthrough
CT: control target
= control target key end

     0   :  { %10 = vsyncpa [#allocation3], 0  ;;  %s990_s0 = inlined_call_operand.hbm [shape: f32[2,8], index: 0, kind: input, shape index: {}]   ;;  %s991_s1 = inlined_call_operand.hbm [shape: f32[8,128], index: 1, kind: input, shape index: {}]   ;;  %s992_s2 = inlined_call_operand.hbm [shape: f32[2,128,128], index: 2, kind: input, shape index: {}]   ;;  %s993_s3 = inlined_call_operand.hbm [shape: f32[128,128], index: 3, kind: input, shape index: {}]   ;;  %s994_s4 = inlined_call_operand.vmem [shape: f32[4,1,128], index: 4, kind: input, shape index: {}]   ;;  %s995_s5 = inlined_call_operand.hbm [shape: f32[2,128], index: 5, kind: output, shape index: {}]  }
   0x1   :  { %11 = vsyncpa [#allocation6], 0 }
   0x2   :  { %12 = vsyncpa [#allocation9], 0 }
   0x3   :  { %13 = vsyncpa [#allocation4], 0  ;;  %s840_s18 = smov [#allocation5]   ;;  %s841_s20 = smov [#allocation2]  }
   0x4   :  { %s30_s19 = sshll.u32 %s840_s18, 4  ;;  %s20_s21 = sshll.u32 %s841_s20, 4  ;;  %s31_s19 = int_to_ptr.vmem [resolvable:$true] %s30_s19  ;;  %s21_s21 = int_to_ptr.vmem [resolvable:$true] %s20_s21 }
   0x5   :  { %s722_s24 = scalar_lea.hbm %s991_s1, 128 }
   0x6   :  { %p723_p0 = scmp.ne.s32.totalorder %s991_s1, %s722_s24  ;;  %p726_p1 = scmp.lt.u32.totalorder %s722_s24, %s991_s1 }
   0x8   :  { %p728_p2 = pnand %p726_p1, %p723_p0 }
   0xa   :  { %731 = shalt.err (!%p728_p2)
}
   0xb   :  { %s732_s29 = scalar_lea.vmem %s31_s19, 128  ;;  %p737_p4 = scmp.lt.s32.totalorder %s31_s19, %s31_s19 }
   0xc   :  { %p733_p3 = scmp.ne.s32.totalorder %s31_s19, %s732_s29  ;;  %p738_p5 = scmp.lt.s32.totalorder %s732_s29, %s732_s29 }
   0xe   :  { %p739_p6 = por %p738_p5, %p737_p4 }
  0x10   :  { %p740_p7 = pnand %p739_p6, %p733_p3 }
  0x12   :  { %743 = shalt.err (!%p740_p7)
}
  0x13   :  { %33 = dma.hbm_to_vmem [thread:$0]  %s991_s1, 128, %s31_s19, [#allocation6]  }
  0x14   :  { %s744_s9 = scalar_lea.hbm %s990_s0, 32 }
  0x15   :  { %p745_p8 = scmp.ne.s32.totalorder %s990_s0, %s744_s9  ;;  %p748_p9 = scmp.lt.u32.totalorder %s744_s9, %s990_s0 }
  0x17   :  { %p750_p10 = pnand %p748_p9, %p745_p8 }
  0x19   :  { %753 = shalt.err (!%p750_p10)
}
  0x1a   :  { %s754_s14 = scalar_lea.vmem %s21_s21, 32  ;;  %p759_p12 = scmp.lt.s32.totalorder %s21_s21, %s21_s21 }
  0x1b   :  { %p755_p11 = scmp.ne.s32.totalorder %s21_s21, %s754_s14  ;;  %p760_p13 = scmp.lt.s32.totalorder %s754_s14, %s754_s14 }
  0x1d   :  { %p761_p0 = por %p760_p13, %p759_p12 }
  0x1f   :  { %p762_p1 = pnand %p761_p0, %p755_p11 }
  0x21   :  { %765 = shalt.err (!%p762_p1)
}
  0x22   :  { %23 = dma.hbm_to_vmem [thread:$0]  %s990_s0, 32, %s21_s21, [#allocation3]  }
  0x23   :  { %s842_s16 = smov [#allocation7]   ;;  %s766_s20 = scalar_lea.hbm %s992_s2, 4096 }
  0x24   :  { %s39_s17 = sshll.u32 %s842_s16, 4  ;;  %p767_p2 = scmp.ne.s32.totalorder %s992_s2, %s766_s20  ;;  %s40_s17 = int_to_ptr.vmem [resolvable:$true] %s39_s17 }
  0x25   :  { %p770_p3 = scmp.lt.u32.totalorder %s766_s20, %s992_s2 }
  0x27   :  { %p772_p4 = pnand %p770_p3, %p767_p2 }
  0x29   :  { %775 = shalt.err (!%p772_p4)
}
  0x2a   :  { %s776_s26 = scalar_lea.vmem %s40_s17, 4096  ;;  %p781_p6 = scmp.lt.s32.totalorder %s40_s17, %s40_s17 }
  0x2b   :  { %p777_p5 = scmp.ne.s32.totalorder %s40_s17, %s776_s26  ;;  %p782_p7 = scmp.lt.s32.totalorder %s776_s26, %s776_s26 }
  0x2d   :  { %p783_p8 = por %p782_p7, %p781_p6 }
  0x2f   :  { %p784_p9 = pnand %p783_p8, %p777_p5 }
  0x31   :  { %787 = shalt.err (!%p784_p9)
}
  0x32   :  { %s843_s0 = smov 128   ;;  %s844_s21 = smov 8  }
  0x33   :  { %45 = dma.hbm_to_vmem [thread:$0]  %s992_s2, 4096, %s40_s17, [#allocation6], %s843_s0, %s843_s0, %s844_s21  }
  0x34   :  { %s845_s29 = smov [#allocation8]   ;;  %s788_s8 = scalar_lea.hbm %s993_s3, 2048 }
  0x35   :  { %s51_s30 = sshll.u32 %s845_s29, 4  ;;  %p789_p10 = scmp.ne.s32.totalorder %s993_s3, %s788_s8  ;;  %s52_s30 = int_to_ptr.vmem [resolvable:$true] %s51_s30 }
  0x36   :  { %p792_p11 = scmp.lt.u32.totalorder %s788_s8, %s993_s3 }
  0x38   :  { %p794_p12 = pnand %p792_p11, %p789_p10 }
  0x3a   :  { %797 = shalt.err (!%p794_p12)
}
  0x3b   :  { %s798_s13 = scalar_lea.vmem %s52_s30, 2048  ;;  %p803_p0 = scmp.lt.s32.totalorder %s52_s30, %s52_s30 }
  0x3c   :  { %p799_p13 = scmp.ne.s32.totalorder %s52_s30, %s798_s13  ;;  %p804_p1 = scmp.lt.s32.totalorder %s798_s13, %s798_s13 }
  0x3e   :  { %p805_p2 = por %p804_p1, %p803_p0 }
  0x40   :  { %p806_p3 = pnand %p805_p2, %p799_p13 }
  0x42   :  { %809 = shalt.err (!%p806_p3)
}
  0x43   :  { %57 = dma.hbm_to_vmem [thread:$0]  %s993_s3, 2048, %s52_s30, [#allocation9], %s843_s0, %s843_s0, %s844_s21  }
  0x44   :  { %832 = dma.done.wait [#allocation3], 32  }
  0x45   :  { %833 = vsyncadd [#allocation3], 4294967264 }
  0x46   :  { %834 = dma.done.wait [#allocation6], 4224  }
  0x47   :  { %835 = vsyncadd [#allocation6], 4294963072 }
  0x48   :  { %836 = dma.done.wait [#allocation9], 2048  }
  0x49   :  { %837 = vsyncadd [#allocation9], 4294965248  ;;  %v846_v0 = vmov 2   ;;  %v847_v1 = vmov 0   ;;  %v848_v2 = vmov 0.0|0.0   ;;  %v166_v4 = vld [vmem:[#allocation7] sm:$0xff]  ;;  %v83_v56 = vlaneseq }
  0x4a   :  { %715 = vset.pattern.permute.xlu1 %v846_v0  ;;  %713 = vset.pattern.permute.xlu0 %v847_v1  ;;  %v72_v3 = vld [vmem:[#allocation2] sm:$0x3]  ;;  %v167_v5 = vld [vmem:[#allocation7 + $0x8] sm:$0xff]  ;;  %v169_v8 = vld [vmem:[#allocation7 + $0x18] sm:$0xff]  ;;  %v849_v10 = vmov 3   ;;  %v850_v11 = vmov 1  }
  0x4b   :  { %623 = vmatprep.subr.bf16.mxu0 %v848_v2  ;;  %647 = vmatprep.subr.bf16.mxu1 %v848_v2  ;;  %v624_v6 = vpack.c.bf16 %v167_v5, %v166_v4  ;;  %v168_v7 = vld [vmem:[#allocation7 + $0x10] sm:$0xff]  ;;  %v170_v12 = vld [vmem:[#allocation7 + $0x20] sm:$0xff]  ;;  %v171_v13 = vld [vmem:[#allocation7 + $0x28] sm:$0xff]  ;;  %v851_v17 = vmov 4   ;;  %v852_v18 = vmov 5   ;;  %v853_v22 = vmov 6  }
  0x4c   :  { %106 = vperm.xlu1 %715, %v72_v3   ;;  %80 = vperm.xlu0 %713, %v72_v3   ;;  %v627_v9 = vpack.c.bf16 %v169_v8, %v168_v7  ;;  %v630_v14 = vpack.c.bf16 %v171_v13, %v170_v12  ;;  %v172_v15 = vld [vmem:[#allocation7 + $0x30] sm:$0xff]  ;;  %v173_v16 = vld [vmem:[#allocation7 + $0x38] sm:$0xff]  ;;  %v174_v20 = vld [vmem:[#allocation7 + $0x40] sm:$0xff]  ;;  %v854_v23 = vmov 7   ;;  %vm855_vm0 = vmmov 0   ;;  %s857_s22 = smov [#allocation10]  }
  0x4d   :  { %625 = vmatpush3.bf16.msra.mxu0 %v624_v6  ;;  %v633_v19 = vpack.c.bf16 %v173_v16, %v172_v15  ;;  %v175_v21 = vld [vmem:[#allocation7 + $0x48] sm:$0xff]  ;;  %v176_v25 = vld [vmem:[#allocation7 + $0x50] sm:$0xff]  ;;  %v177_v26 = vld [vmem:[#allocation7 + $0x58] sm:$0xff]  ;;  %v856_v33 = vmov 0.0   ;;  %v84_v57 = vshrl.u32 %v83_v56, 7  ;;  %s452_s23 = sshll.u32 %s857_s22, 4  ;;  %s453_s23 = int_to_ptr.vmem [resolvable:$true] %s452_s23 }
  0x4e   :  { %626 = vmatprep.subr.bf16.mxu0 %v848_v2  ;;  %v636_v24 = vpack.c.bf16 %v175_v21, %v174_v20  ;;  %v639_v27 = vpack.c.bf16 %v177_v26, %v176_v25  ;;  %v178_v28 = vld [vmem:[#allocation7 + $0x60] sm:$0xff]  ;;  %v179_v29 = vld [vmem:[#allocation7 + $0x68] sm:$0xff]  ;;  %v180_v31 = vld [vmem:[#allocation7 + $0x70] sm:$0xff]  ;;  %550 = vmatprep.mubr.msk.f32.mxu0 %vm855_vm0, %v856_v33  ;;  %s810_s24 = scalar_lea.vmem %s453_s23, 32  ;;  %p815_p5 = scmp.lt.s32.totalorder %s453_s23, %s453_s23 }
  0x4f   :  { %v642_v30 = vpack.c.bf16 %v179_v29, %v178_v28  ;;  %v181_v32 = vld [vmem:[#allocation7 + $0x78] sm:$0xff]  ;;  %585 = vmatprep.mubr.msk.f32.mxu1 %vm855_vm0, %v856_v33  ;;  %v260_v34 = vld [vmem:[#allocation7 + $0x80] sm:$0xff]  ;;  %v261_v35 = vld [vmem:[#allocation7 + $0x88] sm:$0xff]  ;;  %v85_v58 = vsub.s32 0, %v84_v57  ;;  %v101_v61 = vsub.s32 1, %v84_v57  ;;  %v111_v62 = vsub.s32 2, %v84_v57  ;;  %p811_p4 = scmp.ne.s32.totalorder %s453_s23, %s810_s24  ;;  %p816_p6 = scmp.lt.s32.totalorder %s810_s24, %s810_s24 }
  0x50   :  { %716 = vset.pattern.permute.xlu1 %v849_v10  ;;  %714 = vset.pattern.permute.xlu0 %v850_v11  ;;  %v262_v36 = vld [vmem:[#allocation7 + $0x90] sm:$0xff]  ;;  %v645_v37 = vpack.c.bf16 %v181_v32, %v180_v31  ;;  %v648_v38 = vpack.c.bf16 %v261_v35, %v260_v34  ;;  %v263_v39 = vld [vmem:[#allocation7 + $0x98] sm:$0xff]  ;;  %v264_v41 = vld [vmem:[#allocation7 + $0xa0] sm:$0xff]  ;;  %v121_v4 = vsub.s32 3, %v84_v57  ;;  %v131_v6 = vsub.s32 4, %v84_v57 }
  0x51   :  { %116 = vperm.xlu1 %716, %v72_v3   ;;  %96 = vperm.xlu0 %714, %v72_v3   ;;  %v651_v40 = vpack.c.bf16 %v263_v39, %v262_v36  ;;  %v265_v42 = vld [vmem:[#allocation7 + $0xa8] sm:$0xff]  ;;  %v266_v44 = vld [vmem:[#allocation7 + $0xb0] sm:$0xff]  ;;  %v267_v45 = vld [vmem:[#allocation7 + $0xb8] sm:$0xff]  ;;  %v141_v11 = vsub.s32 5, %v84_v57  ;;  %p817_p7 = por %p816_p6, %p815_p5 }
  0x52   :  { %628 = vmatpush3.bf16.msra.mxu0 %v627_v9  ;;  %649 = vmatpush3.bf16.msra.mxu1 %v648_v38  ;;  %v654_v43 = vpack.c.bf16 %v265_v42, %v264_v41  ;;  %v657_v46 = vpack.c.bf16 %v267_v45, %v266_v44  ;;  %v268_v47 = vld [vmem:[#allocation7 + $0xc0] sm:$0xff]  ;;  %v269_v48 = vld [vmem:[#allocation7 + $0xc8] sm:$0xff]  ;;  %v270_v50 = vld [vmem:[#allocation7 + $0xd0] sm:$0xff] }
  0x53   :  { %629 = vmatprep.subr.bf16.mxu0 %v848_v2  ;;  %650 = vmatprep.subr.bf16.mxu1 %v848_v2  ;;  %v660_v49 = vpack.c.bf16 %v269_v48, %v268_v47  ;;  %v271_v51 = vld [vmem:[#allocation7 + $0xd8] sm:$0xff]  ;;  %v272_v53 = vld [vmem:[#allocation7 + $0xe0] sm:$0xff]  ;;  %v273_v54 = vld [vmem:[#allocation7 + $0xe8] sm:$0xff]  ;;  %p818_p8 = pnand %p817_p7, %p811_p4 }
  0x54   :  { %v663_v52 = vpack.c.bf16 %v271_v51, %v270_v50  ;;  %v666_v55 = vpack.c.bf16 %v273_v54, %v272_v53  ;;  %v77_v59 = vld [vmem:[#allocation5] sm:$0xff]  ;;  %v463_v1 = vld [vmem:[%s994_s4] ss:$0 sm:$0xff]  ;;  %v274_v39 = vld [vmem:[#allocation7 + $0xf0] sm:$0xff] }
  0x55   :  { %717 = vset.pattern.permute.xlu1 %v851_v17  ;;  %718 = vset.pattern.permute.xlu0 %v852_v18  ;;  %v86_v60 = vrot.slane %v77_v59, %v85_v58  ;;  %v102_v5 = vrot.slane %v77_v59, %v101_v61  ;;  %v112_v7 = vrot.slane %v77_v59, %v111_v62  ;;  %v151_v18 = vsub.s32 6, %v84_v57  ;;  %v353_v42 = vld [vmem:[#allocation8] sm:$0xff]  ;;  %v355_v44 = vld [vmem:[#allocation8 + $0x10] sm:$0xff]  ;;  %v360_v51 = vld [vmem:[#allocation8 + $0x38] sm:$0xff] }
  0x56   :  { %126 = vperm.xlu1 %717, %v72_v3   ;;  %136 = vperm.xlu0 %718, %v72_v3   ;;  %v122_v12 = vrot.slane %v77_v59, %v121_v4  ;;  %v142_v17 = vrot.slane %v77_v59, %v141_v11  ;;  %v357_v48 = vld [vmem:[#allocation8 + $0x20] sm:$0xff]  ;;  %v362_v54 = vld [vmem:[#allocation8 + $0x48] sm:$0xff]  ;;  %v363_v56 = vld [vmem:[#allocation8 + $0x50] sm:$0xff] }
  0x57   :  { %631 = vmatpush3.bf16.msra.mxu0 %v630_v14  ;;  %652 = vmatpush3.bf16.msra.mxu1 %v651_v40  ;;  %v132_v14 = vrot.slane %v77_v59, %v131_v6  ;;  %v152_v26 = vrot.slane %v77_v59, %v151_v18  ;;  %v275_v40 = vld [vmem:[#allocation7 + $0xf8] sm:$0xff]  ;;  %v361_v53 = vld [vmem:[#allocation8 + $0x40] sm:$0xff]  ;;  %v464_v62 = vld [vmem:[%s994_s4 + $0x1] ss:$0 sm:$0xff] }
  0x58   :  { %632 = vmatprep.subr.bf16.mxu0 %v848_v2  ;;  %653 = vmatprep.subr.bf16.mxu1 %v848_v2  ;;  %v669_v41 = vpack.c.bf16 %v275_v40, %v274_v39  ;;  %v367_v4 = vld [vmem:[#allocation8 + $0x70] sm:$0xff] }
  0x59   :  { %v466_v11 = vld [vmem:[%s994_s4 + $0x3] ss:$0 sm:$0xff] }
  0x5a   :  { %719 = vset.pattern.permute.xlu1 %v853_v22  ;;  %721 = vset.pattern.permute.xlu0 %v854_v23 }
  0x5b   :  { %146 = vperm.xlu1 %719, %v72_v3   ;;  %634 = vmatpush3.bf16.msra.mxu0 %v633_v19 }
  0x5c   :  { %635 = vmatprep.subr.bf16.mxu0 %v848_v2  ;;  %655 = vmatpush3.bf16.msra.mxu1 %v654_v43  ;;  %v354_v43 = vld [vmem:[#allocation8 + $0x8] sm:$0xff] }
  0x5d   :  { %656 = vmatprep.subr.bf16.mxu1 %v848_v2  ;;  %v672_v45 = vpack.c.bf16 %v354_v43, %v353_v42 }
  0x5f   :  { %720 = vset.pattern.permute.xlu1 %v854_v23  ;;  %637 = vmatpush3.bf16.msra.mxu0 %v636_v24 }
  0x60   :  { %156 = vperm.xlu1 %720, %v72_v3   ;;  %638 = vmatprep.subr.bf16.mxu0 %v848_v2 }
  0x61   :  { %658 = vmatpush3.bf16.msra.mxu1 %v657_v46  ;;  %v356_v46 = vld [vmem:[#allocation8 + $0x18] sm:$0xff] }
  0x62   :  { %659 = vmatprep.subr.bf16.mxu1 %v848_v2  ;;  %v675_v47 = vpack.c.bf16 %v356_v46, %v355_v44 }
  0x63   :  { %640 = vmatpush3.bf16.msra.mxu0 %v639_v27  ;;  %v161_v27 = vsub.s32 7, %v84_v57  ;;  %v364_v57 = vld [vmem:[#allocation8 + $0x58] sm:$0xff] }
  0x64   :  { %641 = vmatprep.subr.bf16.mxu0 %v848_v2  ;;  %v687_v58 = vpack.c.bf16 %v364_v57, %v363_v56 }
  0x65   :  { %661 = vmatpush3.bf16.msra.mxu1 %v660_v49  ;;  %v162_v32 = vrot.slane %v77_v59, %v161_v27  ;;  %v358_v49 = vld [vmem:[#allocation8 + $0x28] sm:$0xff]  ;;  %v365_v59 = vld [vmem:[#allocation8 + $0x60] sm:$0xff] }
  0x66   :  { %662 = vmatprep.subr.bf16.mxu1 %v848_v2  ;;  %v678_v50 = vpack.c.bf16 %v358_v49, %v357_v48 }
  0x67   :  { %643 = vmatpush3.bf16.msra.mxu0 %v642_v30 }
  0x68   :  { %644 = vmatprep.subr.bf16.mxu0 %v848_v2 }
  0x69   :  { %664 = vmatpush3.bf16.msra.mxu1 %v663_v52 }
  0x6a   :  { %665 = vmatprep.subr.bf16.mxu1 %v848_v2 }
  0x6b   :  { %646 = vmatpush3.bf16.msra.mxu0 %v645_v37 }
  0x6c   :  { %671 = vmatprep.subr.bf16.mxu0 %v848_v2 }
  0x6d   :  { %667 = vmatpush3.bf16.msra.mxu1 %v666_v55  ;;  %v684_v55 = vpack.c.bf16 %v362_v54, %v361_v53 }
  0x6e   :  { %668 = vmatprep.subr.bf16.mxu1 %v848_v2 }
  0x71   :  { %670 = vmatpush3.bf16.msra.mxu1 %v669_v41 }
  0xcb   :  { %v107_v63 = vpop.permute.xlu1 %106  ;;  %v81_v0 = vpop.permute.xlu0 %80 }
  0xcc   :  { %v87_v3 = vmul.f32 %v86_v60, %v81_v0  ;;  %v113_v15 = vmul.f32 %v112_v7, %v107_v63  ;;  %v366_v60 = vld [vmem:[#allocation8 + $0x68] sm:$0xff]  ;;  %v465_v7 = vld [vmem:[%s994_s4 + $0x2] ss:$0 sm:$0xff] }
  0xcd   :  { %v690_v61 = vpack.c.bf16 %v366_v60, %v365_v59 }
  0xce   :  { %v94_v8 = vadd.f32 %v463_v1, %v87_v3 }
  0xd0   :  { %v117_v9 = vpop.permute.xlu1 %116  ;;  %v97_v10 = vpop.permute.xlu0 %96 }
  0xd1   :  { %v103_v13 = vmul.f32 %v102_v5, %v97_v10  ;;  %v123_v19 = vmul.f32 %v122_v12, %v117_v9  ;;  %v368_v5 = vld [vmem:[#allocation8 + $0x78] sm:$0xff] }
  0xd2   :  { %v693_v6 = vpack.c.bf16 %v368_v5, %v367_v4 }
  0xd3   :  { %v104_v16 = vadd.f32 %v103_v13, %v94_v8 }
  0xd5   :  { %v114_v20 = vadd.f32 %v113_v15, %v104_v16  ;;  %v127_v21 = vpop.permute.xlu1 %126  ;;  %v137_v22 = vpop.permute.xlu0 %136 }
  0xd6   :  { %v133_v23 = vmul.f32 %v132_v14, %v127_v21  ;;  %v143_v25 = vmul.f32 %v142_v17, %v137_v22 }
  0xd7   :  { %v124_v24 = vadd.f32 %v123_v19, %v114_v20 }
  0xd9   :  { %v134_v28 = vadd.f32 %v133_v23, %v124_v24 }
  0xda   :  { %v147_v29 = vpop.permute.xlu1 %146 }
  0xdb   :  { %v144_v30 = vadd.f32 %v143_v25, %v134_v28  ;;  %v153_v31 = vmul.f32 %v152_v26, %v147_v29 }
  0xdd   :  { %v154_v35 = vadd.f32 %v153_v31, %v144_v30 }
  0xdf   :  { %v157_v34 = vpop.permute.xlu1 %156 }
  0xe0   :  { %v163_v36 = vmul.f32 %v162_v32, %v157_v34 }
  0xe2   :  { %v164_v37 = vadd.f32 %v163_v36, %v154_v35 }
  0xe4   :  { %v165_v38 = vmax.f32 %v164_v37, 0.0 }
  0xe6   :  { %551 = vmatmul.mubr.f32.vlgmr.msra.gmra.mrb[0].mxu0 %v165_v38 }
  0xe7   :  { %620 = vmatprep.mubr.msk.f32.mxu0 %vm855_vm0, %v856_v33  ;;  %673 = vmatpush3.bf16.msra.mxu0 %v672_v45  ;;  %v359_v33 = vld [vmem:[#allocation8 + $0x30] sm:$0xff] }
  0xe8   :  { %674 = vmatprep.subr.bf16.mxu0 %v848_v2  ;;  %v681_v52 = vpack.c.bf16 %v360_v51, %v359_v33 }
  0xeb   :  { %676 = vmatpush3.bf16.msra.mxu0 %v675_v47 }
  0xec   :  { %677 = vmatprep.subr.bf16.mxu0 %v848_v2 }
  0xef   :  { %679 = vmatpush3.bf16.msra.mxu0 %v678_v50 }
  0xf0   :  { %680 = vmatprep.subr.bf16.mxu0 %v848_v2 }
  0xf3   :  { %682 = vmatpush3.bf16.msra.mxu0 %v681_v52 }
  0xf4   :  { %683 = vmatprep.subr.bf16.mxu0 %v848_v2 }
  0xf7   :  { %685 = vmatpush3.bf16.msra.mxu0 %v684_v55 }
  0xf8   :  { %686 = vmatprep.subr.bf16.mxu0 %v848_v2 }
  0xfb   :  { %688 = vmatpush3.bf16.msra.mxu0 %v687_v58 }
  0xfc   :  { %689 = vmatprep.subr.bf16.mxu0 %v848_v2 }
  0xff   :  { %691 = vmatpush3.bf16.msra.mxu0 %v690_v61 }
 0x100   :  { %692 = vmatprep.subr.bf16.mxu0 %v848_v2 }
 0x103   :  { %694 = vmatpush3.bf16.msra.mxu0 %v693_v6 }
 0x1b9   :  { %v254_v63 = vpop.f32.mrb[0].mxu0 }
 0x1ba   :  { %v255_v0 = vadd.f32 %v464_v62, %v254_v63  ;;  %v552_v1 = vpop.f32.mrb[1].mxu0 }
 0x1bc   :  { %v258_v3 = vmax.f32 %v255_v0, 0.0 }
 0x1be   :  { %586 = vmatmul.mubr.f32.vlgmr.msra.gmra.mrb[0].mxu1 %v258_v3 }
 0x291   :  { %v348_v8 = vpop.f32.mrb[0].mxu1 }
 0x292   :  { %v349_v9 = vadd.f32 %v465_v7, %v348_v8  ;;  %v587_v2 = vpop.f32.mrb[1].mxu1 }
 0x294   :  { %v352_v10 = vmax.f32 %v349_v9, 0.0 }
 0x296   :  { %621 = vmatmul.mubr.f32.vlgmr.msra.gmra.mrb[2].mxu0 %v352_v10 }
 0x369   :  { %v441_v12 = vpop.f32.mrb[2].mxu0 }
 0x36a   :  { %v442_v13 = vadd.f32 %v466_v11, %v441_v12  ;;  %v622_v14 = vpop.f32.mrb[3].mxu0 }
 0x36c   :  { %445 = vst [vmem:[#allocation10] sm:$0x3] %v442_v13 }
 0x36d   :  { %821 = shalt.err (!%p818_p8)
}
 0x36e   :  { %s822_s0 = scalar_lea.hbm %s995_s5, 32 }
 0x36f   :  { %p823_p9 = scmp.ne.s32.totalorder %s995_s5, %s822_s0  ;;  %p826_p10 = scmp.lt.u32.totalorder %s822_s0, %s995_s5 }
 0x371   :  { %p828_p11 = pnand %p826_p10, %p823_p9 }
 0x373   :  { %831 = shalt.err (!%p828_p11)
}
 0x374   :  { %455 = dma.vmem_to_hbm [thread:$0]  %s453_s23, 32, %s995_s5, [#allocation4]  }
 0x375   :  { %838 = dma.done.wait [#allocation4], 32  }
 0x376   :  { %839 = vsyncadd [#allocation4], 4294967264 }
 0x377   :  { %459 = vsyncpa [#allocation3], 1 }
 0x378   :  { %460 = vsyncpa [#allocation6], 1 }
 0x379   :  { %461 = vsyncpa [#allocation9], 1 }
 0x37a   :  { %462 = vsyncpa [#allocation4], 1 }

</bundles_post_ra>
